<compile_context>
chip_gen: v7x
topology: tpu7x:2x2x1
jax: 0.10.0
libtpu: 0.0.40
codegen_flags: <defaults>
</compile_context>

<pallas_src>
import math
import functools

import jax
import jax.numpy as jnp
from jax.experimental import pallas as pl
from jax.experimental.pallas import tpu as pltpu


def _round_up(x, m):
    return ((x + m - 1) // m) * m


def _choose_row_tile(T, row_tile_max=512):
    """Row tile that (a) divides T_pad = round_up(T, 16) so tiling adds no
    extra row padding, (b) is as large as allowed (amortize ~600-cycle
    per-grid-step overhead), and (c) when possible leaves >= 2 grid steps so
    v7x's two TensorCores can split the 'parallel' row axis."""
    T_pad = _round_up(T, 16)           # 16 = bf16 sublane pack
    tm = 16
    for cand in (1024, 512, 256, 128, 64, 32, 16):
        if cand <= row_tile_max and cand <= T_pad and T_pad % cand == 0:
            tm = cand
            break
    while tm > 16 and T_pad // tm < 2:
        tm //= 2                       # power-of-two divisor stays a divisor
    return tm, T_pad


def _fused_mlp_kernel(*refs, n_layers: int, use_bias: bool):
    """Fused Linear(+ReLU) stack.

    refs = (x_ref, w0, [b0], w1, [b1], ..., o_ref).
    Intermediates stay in VMEM/vregs; only the final layer output is stored.
    """
    x_ref = refs[0]
    o_ref = refs[-1]
    wb = refs[1:-1]

    h = x_ref[...]                              # bf16 straight off the HBM stream
    idx = 0
    for li in range(n_layers):
        w = wb[idx][...]                        # bf16, zero-padded lanes/rows
        idx += 1
        acc = jnp.dot(h.astype(jnp.bfloat16), w,
                      preferred_element_type=jnp.float32)
        if use_bias:
            acc = acc + wb[idx][...]            # (1, Dout) f32 broadcast
            idx += 1
        if li < n_layers - 1:                   # nonlin only BETWEEN layers
            acc = jnp.maximum(acc, 0.0)
        h = acc                                 # f32 while in vregs
    o_ref[...] = h.astype(o_ref.dtype)          # bf16 store


def init_mlp_params(key, M, bias_mlp):
    """Deterministic init mirroring nn.Linear defaults (uniform +-1/sqrt(fan_in)).
    Weights stored as (Din, Dout) so the kernel computes y = x @ W + b."""
    params = []
    for m in range(1, len(M)):
        fan_in, fan_out = M[m - 1], M[m]
        key, kw, kb = jax.random.split(key, 3)
        bound = 1.0 / math.sqrt(fan_in)
        w = jax.random.uniform(kw, (fan_in, fan_out), jnp.float32, -bound, bound)
        if bias_mlp:
            b = jax.random.uniform(kb, (1, fan_out), jnp.float32, -bound, bound)
        else:
            b = None
        params.append((w, b))
    return params


def prepare_params(params, M):
    """One-time pad + cast of parameters (hoisted out of the forward call):
    weights -> bf16, Dout (and Din of layers > 0) zero-padded to 128 lanes;
    biases -> f32, lane-padded.  Input feature dim (M[0]) stays unpadded."""
    D_pad = [M[0]] + [_round_up(d, 128) for d in M[1:]]
    flat = []
    for li, (w, b) in enumerate(params):
        din, dout = M[li], M[li + 1]
        dip, dop = D_pad[li], D_pad[li + 1]
        w_p = jnp.zeros((dip, dop), jnp.bfloat16).at[:din, :dout].set(
            w.astype(jnp.bfloat16))
        flat.append(w_p)
        if b is not None:
            b_p = jnp.zeros((1, dop), jnp.float32).at[:, :dout].set(
                b.astype(jnp.float32))
            flat.append(b_p)
    return tuple(flat)


def mlp_forward(x, prepared, M, bias_mlp, *, row_tile=512):
    """Reproduces MLP.forward: optional (T, Fin, xN) -> (T, Fin*xN) reshape,
    then Linear / nonlin / Linear / ... / Linear (no nonlin after the last),
    executed as ONE fused Pallas kernel over row tiles."""
    T = x.shape[0]
    if x.ndim == 3:
        Fin, xN = x.shape[1], x.shape[2]
        assert Fin * xN == M[0]
        x = x.reshape(T, Fin * xN)
    else:
        assert x.shape[1] == M[0]

    n_layers = len(M) - 1
    D_pad = [M[0]] + [_round_up(d, 128) for d in M[1:]]

    tm, T_pad = _choose_row_tile(T, row_tile)

    # Stream x in bf16; pad only the <=15 extra rows (fused with the cast).
    x_bf = x.astype(jnp.bfloat16)
    if T_pad != T:
        x_bf = jnp.pad(x_bf, ((0, T_pad - T), (0, 0)))

    inputs = [x_bf]
    in_specs = [pl.BlockSpec((tm, M[0]), lambda i: (i, 0))]

    idx = 0
    for li in range(n_layers):
        dip, dop = D_pad[li], D_pad[li + 1]
        inputs.append(prepared[idx]); idx += 1
        in_specs.append(pl.BlockSpec((dip, dop), lambda i: (0, 0)))
        if bias_mlp:
            inputs.append(prepared[idx]); idx += 1
            in_specs.append(pl.BlockSpec((1, dop), lambda i: (0, 0)))

    kernel = functools.partial(_fused_mlp_kernel,
                               n_layers=n_layers,
                               use_bias=bias_mlp)

    out_p = pl.pallas_call(
        kernel,
        out_shape=jax.ShapeDtypeStruct((T_pad, D_pad[-1]), jnp.bfloat16),
        grid=(T_pad // tm,),
        in_specs=in_specs,
        out_specs=pl.BlockSpec((tm, D_pad[-1]), lambda i: (i, 0)),
        compiler_params=pltpu.CompilerParams(
            dimension_semantics=("parallel",)),
    )(*inputs)

    # Caller-facing dtype is f32 (matches the torch module); slice + cast fuse.
    return out_p[:T, :M[-1]].astype(jnp.float32)


if __name__ == "__main__":
    # Module config: M = [Fin*xN, hidden, out]; nonlin = ReLU; bias_mlp = True
    T, Fin, xN = 2, 4, 16
    M = [Fin * xN, 32, 16]
    bias_mlp = True

    key = jax.random.PRNGKey(0)
    key, kx = jax.random.split(key)
    x = jax.random.normal(kx, (T, Fin, xN), jnp.float32)

    params = init_mlp_params(key, M, bias_mlp)
    prepared = prepare_params(params, M)          # hoisted: done once

    fwd = jax.jit(functools.partial(mlp_forward, M=M, bias_mlp=bias_mlp))
    out = fwd(x, prepared)
    jax.block_until_ready(out)
    assert out.shape == (T, M[-1]), out.shape

    # Pure-JAX reference with the same bf16 matmul casts and bf16 final store.
    h = x.reshape(T, M[0]).astype(jnp.float32)
    for li, (w, b) in enumerate(params):
        h = jnp.dot(h.astype(jnp.bfloat16).astype(jnp.float32),
                    w.astype(jnp.bfloat16).astype(jnp.float32))
        if bias_mlp:
            h = h + b
        if li < len(params) - 1:
            h = jnp.maximum(h, 0.0)
    ref = h.astype(jnp.bfloat16).astype(jnp.float32)
    assert jnp.allclose(out, ref, rtol=2e-2, atol=2e-2), \
        float(jnp.max(jnp.abs(out - ref)))

    print("KERNEL_OK")
</pallas_src>

<mosaic_0001>
module attributes {stable_mosaic.version = 11 : i64} {
  func.func @_fused_mlp_kernel(%arg0: i32, %arg1: memref<16x64xbf16, #tpu.memory_space<vmem>>, %arg2: memref<64x128xbf16, #tpu.memory_space<vmem>>, %arg3: memref<1x128xf32, #tpu.memory_space<vmem>>, %arg4: memref<128x128xbf16, #tpu.memory_space<vmem>>, %arg5: memref<1x128xf32, #tpu.memory_space<vmem>>, %arg6: memref<16x128xbf16, #tpu.memory_space<vmem>>) attributes {dimension_semantics = [#tpu.dimension_semantics<parallel>], iteration_bounds = array<i64: 1>, scalar_prefetch = 0 : i64, scratch_operands = 0 : i64, tpu.core_type = #tpu.core_type<tc>, window_params = [{transform_indices = @transform_0, window_bounds = array<i64: 16, 64>}, {pipeline_mode = #tpu.pipeline_mode<synchronous>, transform_indices = @transform_1, window_bounds = array<i64: 64, 128>}, {pipeline_mode = #tpu.pipeline_mode<synchronous>, transform_indices = @transform_2, window_bounds = array<i64: 1, 128>}, {pipeline_mode = #tpu.pipeline_mode<synchronous>, transform_indices = @transform_3, window_bounds = array<i64: 128, 128>}, {pipeline_mode = #tpu.pipeline_mode<synchronous>, transform_indices = @transform_4, window_bounds = array<i64: 1, 128>}, {transform_indices = @transform_5, window_bounds = array<i64: 16, 128>}]} {
    %c0 = arith.constant 0 : index
    %c0_0 = arith.constant 0 : index
    %0 = vector.load %arg1[%c0, %c0_0] : memref<16x64xbf16, #tpu.memory_space<vmem>>, vector<16x64xbf16>
    %c0_1 = arith.constant 0 : index
    %c0_2 = arith.constant 0 : index
    %1 = vector.load %arg2[%c0_1, %c0_2] : memref<64x128xbf16, #tpu.memory_space<vmem>>, vector<64x128xbf16>
    %cst = arith.constant dense<0.000000e+00> : vector<16x128xf32>
    %2 = tpu.matmul %0, %1, %cst {dimension_numbers = #tpu.dot_dimension_numbers<[1], [0], [0], [1], [0, 0, 1, 1], [], []>} : vector<16x64xbf16>, vector<64x128xbf16>, vector<16x128xf32> -> vector<16x128xf32>
    %c0_3 = arith.constant 0 : index
    %c0_4 = arith.constant 0 : index
    %3 = vector.load %arg3[%c0_3, %c0_4] : memref<1x128xf32, #tpu.memory_space<vmem>>, vector<1x128xf32>
    %4 = vector.broadcast %3 : vector<1x128xf32> to vector<16x128xf32>
    %5 = arith.addf %2, %4 : vector<16x128xf32>
    %cst_5 = arith.constant 0.000000e+00 : f32
    %6 = vector.broadcast %cst_5 : f32 to vector<16x128xf32>
    %7 = arith.maximumf %5, %6 : vector<16x128xf32>
    %c0_6 = arith.constant 0 : index
    %c0_7 = arith.constant 0 : index
    %8 = vector.load %arg4[%c0_6, %c0_7] : memref<128x128xbf16, #tpu.memory_space<vmem>>, vector<128x128xbf16>
    %9 = arith.truncf %7 : vector<16x128xf32> to vector<16x128xbf16>
    %cst_8 = arith.constant dense<0.000000e+00> : vector<16x128xf32>
    %10 = tpu.matmul %9, %8, %cst_8 {dimension_numbers = #tpu.dot_dimension_numbers<[1], [0], [0], [1], [0, 0, 1, 1], [], []>} : vector<16x128xbf16>, vector<128x128xbf16>, vector<16x128xf32> -> vector<16x128xf32>
    %c0_9 = arith.constant 0 : index
    %c0_10 = arith.constant 0 : index
    %11 = vector.load %arg5[%c0_9, %c0_10] : memref<1x128xf32, #tpu.memory_space<vmem>>, vector<1x128xf32>
    %12 = vector.broadcast %11 : vector<1x128xf32> to vector<16x128xf32>
    %13 = arith.addf %10, %12 : vector<16x128xf32>
    %14 = arith.truncf %13 : vector<16x128xf32> to vector<16x128xbf16>
    %c0_11 = arith.constant 0 : index
    %c0_12 = arith.constant 0 : index
    %15 = vector.load %arg6[%c0_11, %c0_12] : memref<16x128xbf16, #tpu.memory_space<vmem>>, vector<16x128xbf16>
    tpu.vector_store %arg6[%c0_11, %c0_12], %14 {strides = array<i32>} : memref<16x128xbf16, #tpu.memory_space<vmem>>, vector<16x128xbf16>,
    return
  }
  func.func @transform_0(%arg0: i32) -> (i32, i32) {
    %c0_i32 = arith.constant 0 : i32
    %c0_i32_0 = arith.constant 0 : i32
    return %arg0, %c0_i32 : i32, i32
  }
  func.func @transform_1(%arg0: i32) -> (i32, i32) {
    %c0_i32 = arith.constant 0 : i32
    %c0_i32_0 = arith.constant 0 : i32
    %c0_i32_1 = arith.constant 0 : i32
    return %c0_i32, %c0_i32_0 : i32, i32
  }
  func.func @transform_2(%arg0: i32) -> (i32, i32) {
    %c0_i32 = arith.constant 0 : i32
    %c0_i32_0 = arith.constant 0 : i32
    %c0_i32_1 = arith.constant 0 : i32
    return %c0_i32, %c0_i32_0 : i32, i32
  }
  func.func @transform_3(%arg0: i32) -> (i32, i32) {
    %c0_i32 = arith.constant 0 : i32
    %c0_i32_0 = arith.constant 0 : i32
    %c0_i32_1 = arith.constant 0 : i32
    return %c0_i32, %c0_i32_0 : i32, i32
  }
  func.func @transform_4(%arg0: i32) -> (i32, i32) {
    %c0_i32 = arith.constant 0 : i32
    %c0_i32_0 = arith.constant 0 : i32
    %c0_i32_1 = arith.constant 0 : i32
    return %c0_i32, %c0_i32_0 : i32, i32
  }
  func.func @transform_5(%arg0: i32) -> (i32, i32) {
    %c0_i32 = arith.constant 0 : i32
    %c0_i32_0 = arith.constant 0 : i32
    return %arg0, %c0_i32 : i32, i32
  }
}

</mosaic_0001>

<bundles_post_ra>
// kernel: mlp_forward.1
= control target key start
LH: loop header
LB: loop body
LE: loop exit
PB: predicated region body
PF: predicated region fallthrough
CT: control target
= control target key end

     0   :  { %10 = vsyncpa [#allocation3], 0  ;;  %s481_s0 = inlined_call_operand.vmem [shape: bf16[16,64], index: 0, kind: input, shape index: {}]   ;;  %s482_s1 = inlined_call_operand.hbm [shape: bf16[64,128], index: 1, kind: input, shape index: {}]   ;;  %s483_s2 = inlined_call_operand.vmem [shape: f32[1,128], index: 2, kind: input, shape index: {}]   ;;  %s484_s3 = inlined_call_operand.hbm [shape: bf16[128,128], index: 3, kind: input, shape index: {}]   ;;  %s485_s4 = inlined_call_operand.vmem [shape: f32[1,128], index: 4, kind: input, shape index: {}]   ;;  %s486_s5 = inlined_call_operand.vmem [shape: bf16[16,128], index: 5, kind: output, shape index: {}]  }
   0x1   :  { %11 = vsyncpa [#allocation5], 0  ;;  %s409_s18 = smov [#allocation2]   ;;  %s361_s22 = scalar_lea.hbm %s482_s1, 512 }
   0x2   :  { %s19_s19 = sshll.u32 %s409_s18, 4  ;;  %p362_p0 = scmp.ne.s32.totalorder %s482_s1, %s361_s22  ;;  %s20_s19 = int_to_ptr.vmem [resolvable:$true] %s19_s19 }
   0x3   :  { %p365_p1 = scmp.lt.u32.totalorder %s361_s22, %s482_s1 }
   0x5   :  { %p367_p2 = pnand %p365_p1, %p362_p0 }
   0x7   :  { %370 = shalt.err (!%p367_p2)
}
   0x8   :  { %s371_s27 = scalar_lea.vmem %s20_s19, 512  ;;  %p376_p4 = scmp.lt.s32.totalorder %s20_s19, %s20_s19 }
   0x9   :  { %p372_p3 = scmp.ne.s32.totalorder %s20_s19, %s371_s27  ;;  %p377_p5 = scmp.lt.s32.totalorder %s371_s27, %s371_s27 }
   0xb   :  { %p378_p6 = por %p377_p5, %p376_p4 }
   0xd   :  { %p379_p7 = pnand %p378_p6, %p372_p3 }
   0xf   :  { %382 = shalt.err (!%p379_p7)
}
  0x10   :  { %s410_s28 = smov 64   ;;  %s411_s29 = smov 4  }
  0x11   :  { %25 = dma.hbm_to_vmem [thread:$0]  %s482_s1, 512, %s20_s19, [#allocation3], %s410_s28, %s410_s28, %s411_s29  }
  0x12   :  { %s412_s7 = smov [#allocation4]   ;;  %s383_s11 = scalar_lea.hbm %s484_s3, 1024 }
  0x13   :  { %s33_s8 = sshll.u32 %s412_s7, 4  ;;  %p384_p8 = scmp.ne.s32.totalorder %s484_s3, %s383_s11  ;;  %s34_s8 = int_to_ptr.vmem [resolvable:$true] %s33_s8 }
  0x14   :  { %p387_p9 = scmp.lt.u32.totalorder %s383_s11, %s484_s3 }
  0x16   :  { %p389_p10 = pnand %p387_p9, %p384_p8 }
  0x18   :  { %392 = shalt.err (!%p389_p10)
}
  0x19   :  { %s393_s16 = scalar_lea.vmem %s34_s8, 1024  ;;  %p398_p12 = scmp.lt.s32.totalorder %s34_s8, %s34_s8 }
  0x1a   :  { %p394_p11 = scmp.ne.s32.totalorder %s34_s8, %s393_s16  ;;  %p399_p13 = scmp.lt.s32.totalorder %s393_s16, %s393_s16 }
  0x1c   :  { %p400_p0 = por %p399_p13, %p398_p12 }
  0x1e   :  { %p401_p1 = pnand %p400_p0, %p394_p11 }
  0x20   :  { %404 = shalt.err (!%p401_p1)
}
  0x21   :  { %39 = dma.hbm_to_vmem [thread:$0]  %s484_s3, 1024, %s34_s8, [#allocation5], %s410_s28, %s410_s28, %s411_s29  }
  0x22   :  { %405 = dma.done.wait [#allocation3], 512  }
  0x23   :  { %406 = vsyncadd [#allocation3], 4294966784 }
  0x24   :  { %407 = dma.done.wait [#allocation5], 1024  }
  0x25   :  { %408 = vsyncadd [#allocation5], 4294966272  ;;  %v413_v0 = vmov 0.0   ;;  %vm414_vm0 = vmmov 0   ;;  %v348_v1 = vld [vmem:[#allocation2] sm:$0xff]   ;;  %v349_v2 = vld [vmem:[#allocation2 + $0x8] sm:$0xff]  }
  0x26   :  { %310 = vmatprep.subr.bf16.mxu0 %v413_v0  ;;  %318 = vmatprep.mubr.msk.bf16.mxu0 %vm414_vm0, %v413_v0  ;;  %v353_v3 = vld [vmem:[#allocation4] sm:$0xff]   ;;  %v350_v4 = vld [vmem:[#allocation2 + $0x10] sm:$0xff]   ;;  %v354_v5 = vld [vmem:[#allocation4 + $0x8] sm:$0xff]   ;;  %vm95_vm1 = vcmask 523264  }
  0x27   :  { %322 = vmatprep.subr.bf16.mxu1 %v413_v0  ;;  %338 = vmatprep.mubr.msk.bf16.mxu1 %vm414_vm0, %v413_v0  ;;  %v351_v6 = vld [vmem:[#allocation2 + $0x18] sm:$0xff]   ;;  %v355_v7 = vld [vmem:[#allocation4 + $0x10] sm:$0xff]   ;;  %v352_v8 = vld [vmem:[%s481_s0] sm:$0xff]  }
  0x28   :  { %311 = vmatpush3.bf16.msra.mxu0 %v348_v1  ;;  %323 = vmatpush3.bf16.msra.mxu1 %v353_v3  ;;  %v356_v9 = vld [vmem:[#allocation4 + $0x18] sm:$0xff]   ;;  %v357_v10 = vld [vmem:[#allocation4 + $0x20] sm:$0xff]   ;;  %v358_v11 = vld [vmem:[#allocation4 + $0x28] sm:$0xff]  }
  0x29   :  { %312 = vmatprep.subr.bf16.mxu0 %v413_v0  ;;  %324 = vmatprep.subr.bf16.mxu1 %v413_v0  ;;  %v359_v12 = vld [vmem:[#allocation4 + $0x30] sm:$0xff]   ;;  %v360_v13 = vld [vmem:[#allocation4 + $0x38] sm:$0xff]   ;;  %v271_v14 = vld [vmem:[%s483_s2] ss:$0 sm:$0xff] }
  0x2a   :  { %v278_v24 = vld [vmem:[%s485_s4] ss:$0 sm:$0xff] }
  0x2c   :  { %313 = vmatpush3.bf16.msra.mxu0 %v349_v2  ;;  %325 = vmatpush3.bf16.msra.mxu1 %v354_v5 }
  0x2d   :  { %314 = vmatprep.subr.bf16.mxu0 %v413_v0  ;;  %326 = vmatprep.subr.bf16.mxu1 %v413_v0 }
  0x30   :  { %315 = vmatpush3.bf16.msra.mxu0 %v350_v4  ;;  %327 = vmatpush3.bf16.msra.mxu1 %v355_v7 }
  0x31   :  { %316 = vmatprep.subr.bf16.mxu0 %v413_v0  ;;  %328 = vmatprep.subr.bf16.mxu1 %v413_v0 }
  0x34   :  { %317 = vmatpush3.bf16.msra.mxu0 %v351_v6  ;;  %329 = vmatpush3.bf16.msra.mxu1 %v356_v9 }
  0x35   :  { %330 = vmatprep.subr.bf16.mxu1 %v413_v0 }
  0x37   :  { %319 = vmatmul.mubr.msk.bf16.vlgmr.msra.gmra.mrb[0].mxu0 %vm95_vm1, %v352_v8 }
  0x38   :  { %331 = vmatpush3.bf16.msra.mxu1 %v357_v10 }
  0x39   :  { %332 = vmatprep.subr.bf16.mxu1 %v413_v0 }
  0x3c   :  { %333 = vmatpush3.bf16.msra.mxu1 %v358_v11 }
  0x3d   :  { %334 = vmatprep.subr.bf16.mxu1 %v413_v0 }
  0x40   :  { %335 = vmatpush3.bf16.msra.mxu1 %v359_v12 }
  0x41   :  { %336 = vmatprep.subr.bf16.mxu1 %v413_v0 }
  0x44   :  { %337 = vmatpush3.bf16.msra.mxu1 %v360_v13 }
 0x10a   :  { %v133_v15 = vpop.f32.mrb[0].mxu0 }
 0x10b   :  { %v134_v16 = vadd.f32 %v271_v14, %v133_v15  ;;  %v320_v17 = vpop.f32.mrb[1].mxu0 }
 0x10c   :  { %v136_v18 = vpop.f32.mrb[2].mxu0 }
 0x10d   :  { %v137_v19 = vadd.f32 %v271_v14, %v136_v18  ;;  %v321_v20 = vpop.f32.mrb[3].mxu0  ;;  %v140_v21 = vmax.f32 %v134_v16, 0.0 }
 0x10f   :  { %v141_v22 = vmax.f32 %v137_v19, 0.0 }
 0x111   :  { %v158_v23 = vpack.c.bf16 %v141_v22, %v140_v21 }
 0x113   :  { %339 = vmatmul.mubr.bf16.vlgmr.msra.gmra.mrb[0].mxu1 %v158_v23 }
 0x1e6   :  { %v248_v25 = vpop.f32.mrb[0].mxu1 }
 0x1e7   :  { %v340_v26 = vpop.f32.mrb[1].mxu1  ;;  %v249_v28 = vadd.f32 %v278_v24, %v248_v25 }
 0x1e8   :  { %v251_v27 = vpop.f32.mrb[2].mxu1 }
 0x1e9   :  { %v252_v29 = vadd.f32 %v278_v24, %v251_v27  ;;  %v341_v30 = vpop.f32.mrb[3].mxu1 }
 0x1eb   :  { %v294_v31 = vpack.c.bf16 %v252_v29, %v249_v28 }
 0x1ed   :  { %295 = vst [vmem:[%s486_s5] sm:$0xff] %v294_v31  }
 0x1ee   :  { %269 = vsyncpa [#allocation3], 1 }
 0x1ef   :  { %270 = vsyncpa [#allocation5], 1 }

</bundles_post_ra>
